<compile_context>
chip_gen: v6e
topology: v6e:2x2x1
jax: 0.10.0
libtpu: 0.0.40
codegen_flags: <defaults>
</compile_context>

<pallas_src>
import functools

import jax
import jax.numpy as jnp
from jax import lax
from jax.experimental import pallas as pl
from jax.experimental.pallas import tpu as pltpu

LN_EPS = 1e-5  # torch.nn.LayerNorm default


def _round_up(n: int, k: int) -> int:
    return ((n + k - 1) // k) * k


def _mix_u32(x):
    # murmur3 finalizer: turns a per-element counter into pseudo-random bits (VPU-only ops).
    x = x ^ (x >> 16)
    x = x * jnp.uint32(0x85EBCA6B)
    x = x ^ (x >> 13)
    x = x * jnp.uint32(0xC2B2AE35)
    x = x ^ (x >> 16)
    return x


def _projector_kernel(seed_ref, x_ref, gamma_ref, beta_ref, w_ref, bias_ref,
                      o_ref, *, dropout_p, d_in, tile_m, d_out_pad):
    # ---- LayerNorm over the feature axis (f32 statistics) ----
    x = x_ref[...].astype(jnp.float32)                       # [TM, D_in]
    inv_d = jnp.float32(1.0 / d_in)
    mean = jnp.sum(x, axis=-1, keepdims=True) * inv_d         # [TM, 1]
    centered = x - mean
    var = jnp.sum(centered * centered, axis=-1, keepdims=True) * inv_d
    xn = centered * lax.rsqrt(var + LN_EPS)
    y = xn * gamma_ref[...] + beta_ref[...]                   # [TM, D_in] f32

    # ---- Linear: bf16 MXU inputs, f32 accumulation ----
    z = jnp.dot(y.astype(jnp.bfloat16), w_ref[...],
                preferred_element_type=jnp.float32)           # [TM, D_out_pad]
    z = z + bias_ref[...]

    # ---- Tanh ----
    t = jnp.tanh(z)

    # ---- Dropout (training-mode, inverted dropout) ----
    if dropout_p <= 0.0:                                      # compile-time branch
        o_ref[...] = t.astype(o_ref.dtype)
    elif dropout_p >= 1.0:
        o_ref[...] = jnp.zeros_like(t).astype(o_ref.dtype)
    else:
        # Counter-based PRNG: one distinct stream element per global (row, col).
        row_l = lax.broadcasted_iota(jnp.uint32, t.shape, 0)
        col = lax.broadcasted_iota(jnp.uint32, t.shape, 1)
        row_g = row_l + (pl.program_id(0) * tile_m).astype(jnp.uint32)
        ctr = row_g * jnp.uint32(d_out_pad) + col
        seed_u = seed_ref[0].astype(jnp.uint32)
        bits = _mix_u32(ctr * jnp.uint32(0x9E3779B1) + seed_u * jnp.uint32(0x7F4A7C15))
        # Integer-threshold compare on the top 31 bits (no uint->float convert).
        thresh = jnp.int32(min(int(dropout_p * (1 << 31)), (1 << 31) - 1))
        keep = (bits >> 1).astype(jnp.int32) >= thresh        # P(keep) = 1 - p
        scale = jnp.float32(1.0 / (1.0 - dropout_p))
        o_ref[...] = jnp.where(keep, t * scale, 0.0).astype(o_ref.dtype)


def projector_forward(x, gamma, beta, w, bias, seed, dropout_p=0.5, tile_m=256):
    """x: [..., D_in] -> [..., D_out]  (LayerNorm -> Linear -> Tanh -> Dropout)."""
    d_in = x.shape[-1]
    d_out = w.shape[-1]
    lead = x.shape[:-1]
    m = 1
    for s in lead:
        m *= s

    out_dtype = x.dtype

    # Tile sizing: multiple of 8 sublanes; keep 2*TM*(D_in+D_out_pad)*4B + W well
    # inside scoped VMEM (conservative default works for v5e/v6e/v7x).
    tm = min(int(tile_m), _round_up(max(m, 1), 8))
    tm = _round_up(tm, 8)
    m_pad = _round_up(m, tm)
    d_out_pad = _round_up(d_out, 128)     # lane-dense output -> unmasked stores

    x2d = x.reshape(m, d_in)              # keep native dtype; cast to f32 in-kernel
    if m_pad != m:
        x2d = jnp.pad(x2d, ((0, m_pad - m), (0, 0)))

    gamma2d = gamma.reshape(1, d_in).astype(jnp.float32)
    beta2d = beta.reshape(1, d_in).astype(jnp.float32)
    w2d = w.reshape(d_in, d_out).astype(jnp.bfloat16)          # bf16 weights for MXU
    bias2d = bias.reshape(1, d_out).astype(jnp.float32)
    if d_out_pad != d_out:
        w2d = jnp.pad(w2d, ((0, 0), (0, d_out_pad - d_out)))
        bias2d = jnp.pad(bias2d, ((0, 0), (0, d_out_pad - d_out)))

    seed_arr = jnp.asarray([seed], dtype=jnp.int32)

    kernel = functools.partial(
        _projector_kernel, dropout_p=float(dropout_p),
        d_in=d_in, tile_m=tm, d_out_pad=d_out_pad)

    grid_spec = pltpu.PrefetchScalarGridSpec(
        num_scalar_prefetch=1,                   # seed lands in SMEM before the grid
        grid=(m_pad // tm,),
        in_specs=[
            pl.BlockSpec((tm, d_in), lambda i, seed: (i, 0)),        # x tile (pipelined)
            pl.BlockSpec((1, d_in), lambda i, seed: (0, 0)),         # gamma (resident)
            pl.BlockSpec((1, d_in), lambda i, seed: (0, 0)),         # beta  (resident)
            pl.BlockSpec((d_in, d_out_pad), lambda i, seed: (0, 0)),  # W    (resident)
            pl.BlockSpec((1, d_out_pad), lambda i, seed: (0, 0)),    # bias  (resident)
        ],
        out_specs=pl.BlockSpec((tm, d_out_pad), lambda i, seed: (i, 0)),
    )

    out2d = pl.pallas_call(
        kernel,
        out_shape=jax.ShapeDtypeStruct((m_pad, d_out_pad), out_dtype),
        grid_spec=grid_spec,
        compiler_params=pltpu.CompilerParams(
            dimension_semantics=("parallel",),   # row tiles independent -> both TCs on v7x
        ),
    )(seed_arr, x2d, gamma2d, beta2d, w2d, bias2d)

    out2d = out2d[:m, :d_out]
    return out2d.reshape(*lead, d_out)


def _reference_no_dropout(x, gamma, beta, w, bias):
    xf = x.astype(jnp.float32)
    mean = jnp.mean(xf, axis=-1, keepdims=True)
    var = jnp.mean((xf - mean) ** 2, axis=-1, keepdims=True)
    y = (xf - mean) / jnp.sqrt(var + LN_EPS) * gamma + beta
    return jnp.tanh(y @ w + bias)


if __name__ == "__main__":
    # Small, deterministic example: batch=2, seq=8, input_dim=32, output_dim=64
    B, S, D_IN, D_OUT = 2, 8, 32, 64

    key = jax.random.PRNGKey(0)
    kx, kw, kb = jax.random.split(key, 3)

    x = jax.random.normal(kx, (B, S, D_IN), dtype=jnp.float32)

    # Deterministic parameter init (shapes from projector.__init__):
    #   LayerNorm(input_dim): gamma=1, beta=0
    #   Linear(input_dim, output_dim): uniform(-1/sqrt(D_IN), 1/sqrt(D_IN))
    gamma = jnp.ones((D_IN,), dtype=jnp.float32)
    beta = jnp.zeros((D_IN,), dtype=jnp.float32)
    bound = 1.0 / (D_IN ** 0.5)
    w = jax.random.uniform(kw, (D_IN, D_OUT), minval=-bound, maxval=bound,
                           dtype=jnp.float32)
    bias = jax.random.uniform(kb, (D_OUT,), minval=-bound, maxval=bound,
                              dtype=jnp.float32)

    # Sanity check (dropout disabled) against a pure-JAX reference; bf16 MXU inputs
    # allow a small tolerance.
    out_nodrop = projector_forward(x, gamma, beta, w, bias, seed=0, dropout_p=0.0)
    jax.block_until_ready(out_nodrop)
    ref = _reference_no_dropout(x, gamma, beta, w, bias)
    assert out_nodrop.shape == (B, S, D_OUT)
    assert jnp.max(jnp.abs(out_nodrop - ref)) < 5e-2

    # Full forward with training-mode dropout.
    out = projector_forward(x, gamma, beta, w, bias, seed=0, dropout_p=0.5)
    jax.block_until_ready(out)

    assert out.shape == (B, S, D_OUT)
    assert out.dtype == jnp.float32
    n_zero = int(jnp.sum(out == 0.0))
    assert 0 < n_zero < out.size  # some dropped, some kept
    print("KERNEL_OK")
</pallas_src>

<mosaic_0001>
module attributes {stable_mosaic.version = 11 : i64} {
  func.func @_projector_kernel(%arg0: i32, %arg1: memref<1xi32, #tpu.memory_space<smem>>, %arg2: memref<16x32xf32, #tpu.memory_space<vmem>>, %arg3: memref<1x32xf32, #tpu.memory_space<vmem>>, %arg4: memref<1x32xf32, #tpu.memory_space<vmem>>, %arg5: memref<32x128xbf16, #tpu.memory_space<vmem>>, %arg6: memref<1x128xf32, #tpu.memory_space<vmem>>, %arg7: memref<16x128xf32, #tpu.memory_space<vmem>>) attributes {dimension_semantics = [#tpu.dimension_semantics<parallel>], iteration_bounds = array<i64: 1>, scalar_prefetch = 1 : i64, scratch_operands = 0 : i64, tpu.core_type = #tpu.core_type<tc>, window_params = [{transform_indices = @transform_0, window_bounds = array<i64: 16, 32>}, {pipeline_mode = #tpu.pipeline_mode<synchronous>, transform_indices = @transform_1, window_bounds = array<i64: 1, 32>}, {pipeline_mode = #tpu.pipeline_mode<synchronous>, transform_indices = @transform_2, window_bounds = array<i64: 1, 32>}, {pipeline_mode = #tpu.pipeline_mode<synchronous>, transform_indices = @transform_3, window_bounds = array<i64: 32, 128>}, {pipeline_mode = #tpu.pipeline_mode<synchronous>, transform_indices = @transform_4, window_bounds = array<i64: 1, 128>}, {transform_indices = @transform_5, window_bounds = array<i64: 16, 128>}]} {
    %c0 = arith.constant 0 : index
    %c0_0 = arith.constant 0 : index
    %0 = vector.load %arg2[%c0, %c0_0] : memref<16x32xf32, #tpu.memory_space<vmem>>, vector<16x32xf32>
    %cst = arith.constant dense<0.000000e+00> : vector<16xf32>
    %1 = vector.multi_reduction <add>, %0, %cst [1] : vector<16x32xf32> to vector<16xf32>
    %2 = vector.shape_cast %1 : vector<16xf32> to vector<16x1xf32>
    %cst_1 = arith.constant 3.125000e-02 : f32
    %3 = vector.broadcast %cst_1 : f32 to vector<16x1xf32>
    %4 = arith.mulf %2, %3 : vector<16x1xf32>
    %5 = vector.broadcast %4 : vector<16x1xf32> to vector<16x32xf32>
    %6 = arith.subf %0, %5 : vector<16x32xf32>
    %7 = arith.mulf %6, %6 : vector<16x32xf32>
    %cst_2 = arith.constant dense<0.000000e+00> : vector<16xf32>
    %8 = vector.multi_reduction <add>, %7, %cst_2 [1] : vector<16x32xf32> to vector<16xf32>
    %9 = vector.shape_cast %8 : vector<16xf32> to vector<16x1xf32>
    %cst_3 = arith.constant 3.125000e-02 : f32
    %10 = vector.broadcast %cst_3 : f32 to vector<16x1xf32>
    %11 = arith.mulf %9, %10 : vector<16x1xf32>
    %cst_4 = arith.constant 9.99999974E-6 : f32
    %12 = vector.broadcast %cst_4 : f32 to vector<16x1xf32>
    %13 = arith.addf %11, %12 : vector<16x1xf32>
    %14 = math.rsqrt %13 : vector<16x1xf32>
    %15 = vector.broadcast %14 : vector<16x1xf32> to vector<16x32xf32>
    %16 = arith.mulf %6, %15 : vector<16x32xf32>
    %c0_5 = arith.constant 0 : index
    %c0_6 = arith.constant 0 : index
    %17 = vector.load %arg3[%c0_5, %c0_6] : memref<1x32xf32, #tpu.memory_space<vmem>>, vector<1x32xf32>
    %18 = vector.broadcast %17 : vector<1x32xf32> to vector<16x32xf32>
    %19 = arith.mulf %16, %18 : vector<16x32xf32>
    %c0_7 = arith.constant 0 : index
    %c0_8 = arith.constant 0 : index
    %20 = vector.load %arg4[%c0_7, %c0_8] : memref<1x32xf32, #tpu.memory_space<vmem>>, vector<1x32xf32>
    %21 = vector.broadcast %20 : vector<1x32xf32> to vector<16x32xf32>
    %22 = arith.addf %19, %21 : vector<16x32xf32>
    %23 = arith.truncf %22 : vector<16x32xf32> to vector<16x32xbf16>
    %c0_9 = arith.constant 0 : index
    %c0_10 = arith.constant 0 : index
    %24 = vector.load %arg5[%c0_9, %c0_10] : memref<32x128xbf16, #tpu.memory_space<vmem>>, vector<32x128xbf16>
    %cst_11 = arith.constant dense<0.000000e+00> : vector<16x128xf32>
    %25 = tpu.matmul %23, %24, %cst_11 {dimension_numbers = #tpu.dot_dimension_numbers<[1], [0], [0], [1], [0, 0, 1, 1], [], []>} : vector<16x32xbf16>, vector<32x128xbf16>, vector<16x128xf32> -> vector<16x128xf32>
    %c0_12 = arith.constant 0 : index
    %c0_13 = arith.constant 0 : index
    %26 = vector.load %arg6[%c0_12, %c0_13] : memref<1x128xf32, #tpu.memory_space<vmem>>, vector<1x128xf32>
    %27 = vector.broadcast %26 : vector<1x128xf32> to vector<16x128xf32>
    %28 = arith.addf %25, %27 : vector<16x128xf32>
    %29 = math.tanh %28 : vector<16x128xf32>
    %c0_14 = arith.constant 0 : index
    %c0_15 = arith.constant 0 : index
    %30 = vector.load %arg7[%c0_14, %c0_15] : memref<16x128xf32, #tpu.memory_space<vmem>>, vector<16x128xf32>
    tpu.vector_store %arg7[%c0_14, %c0_15], %29 {strides = array<i32>} : memref<16x128xf32, #tpu.memory_space<vmem>>, vector<16x128xf32>,
    return
  }
  func.func @transform_0(%arg0: i32, %arg1: memref<1xi32, #tpu.memory_space<smem>>) -> (i32, i32) {
    %c0_i32 = arith.constant 0 : i32
    %c0_i32_0 = arith.constant 0 : i32
    return %arg0, %c0_i32 : i32, i32
  }
  func.func @transform_1(%arg0: i32, %arg1: memref<1xi32, #tpu.memory_space<smem>>) -> (i32, i32) {
    %c0_i32 = arith.constant 0 : i32
    %c0_i32_0 = arith.constant 0 : i32
    %c0_i32_1 = arith.constant 0 : i32
    return %c0_i32, %c0_i32_0 : i32, i32
  }
  func.func @transform_2(%arg0: i32, %arg1: memref<1xi32, #tpu.memory_space<smem>>) -> (i32, i32) {
    %c0_i32 = arith.constant 0 : i32
    %c0_i32_0 = arith.constant 0 : i32
    %c0_i32_1 = arith.constant 0 : i32
    return %c0_i32, %c0_i32_0 : i32, i32
  }
  func.func @transform_3(%arg0: i32, %arg1: memref<1xi32, #tpu.memory_space<smem>>) -> (i32, i32) {
    %c0_i32 = arith.constant 0 : i32
    %c0_i32_0 = arith.constant 0 : i32
    %c0_i32_1 = arith.constant 0 : i32
    return %c0_i32, %c0_i32_0 : i32, i32
  }
  func.func @transform_4(%arg0: i32, %arg1: memref<1xi32, #tpu.memory_space<smem>>) -> (i32, i32) {
    %c0_i32 = arith.constant 0 : i32
    %c0_i32_0 = arith.constant 0 : i32
    %c0_i32_1 = arith.constant 0 : i32
    return %c0_i32, %c0_i32_0 : i32, i32
  }
  func.func @transform_5(%arg0: i32, %arg1: memref<1xi32, #tpu.memory_space<smem>>) -> (i32, i32) {
    %c0_i32 = arith.constant 0 : i32
    %c0_i32_0 = arith.constant 0 : i32
    return %arg0, %c0_i32 : i32, i32
  }
}

</mosaic_0001>

<bundles_post_ra>
// kernel: tpu_custom_call.1
= control target key start
LH: loop header
LB: loop body
LE: loop exit
PB: predicated region body
PF: predicated region fallthrough
CT: control target
= control target key end

     0   :  { %12 = vsyncpa [#allocation5], 0  ;;  %s364_s0 = inlined_call_operand.<no memory space> [shape: s32[1], index: 0, kind: input, shape index: {}]   ;;  %s365_s1 = inlined_call_operand.hbm [shape: f32[16,32], index: 1, kind: input, shape index: {}]   ;;  %s366_s2 = inlined_call_operand.vmem [shape: f32[1,32], index: 2, kind: input, shape index: {}]   ;;  %s367_s3 = inlined_call_operand.vmem [shape: f32[1,32], index: 3, kind: input, shape index: {}]   ;;  %s368_s4 = inlined_call_operand.hbm [shape: bf16[32,128], index: 4, kind: input, shape index: {}]   ;;  %s369_s5 = inlined_call_operand.vmem [shape: f32[1,128], index: 5, kind: input, shape index: {}]   ;;  %s370_s6 = inlined_call_operand.hbm [shape: f32[16,128], index: 6, kind: output, shape index: {}]  }
   0x1   :  { %13 = vsyncpa [#allocation8], 0 }
   0x2   :  { %14 = vsyncpa [#allocation6], 0  ;;  %s291_s0 = smov [#allocation4]  }
   0x3   :  { %s20_s21 = sshll.u32 %s291_s0, 4  ;;  %s21_s21 = int_to_ptr.vmem [resolvable:$true] %s20_s21 }
   0x4   :  { %s233_s22 = scalar_lea.vmem %s21_s21, 256  ;;  %p238_p1 = scmp.lt.s32.totalorder %s21_s21, %s21_s21 }
   0x5   :  { %p234_p0 = scmp.ne.s32.totalorder %s21_s21, %s233_s22  ;;  %p239_p2 = scmp.lt.s32.totalorder %s233_s22, %s233_s22 }
   0x7   :  { %p240_p3 = por %p239_p2, %p238_p1 }
   0x9   :  { %p241_p4 = pnand %p240_p3, %p234_p0 }
   0xb   :  { %244 = shalt.err (!%p241_p4)
}
   0xc   :  { %s292_s23 = smov 128   ;;  %s293_s24 = smov 8  }
   0xd   :  { %26 = dma.hbm_to_vmem [thread:$0]  %s365_s1, 256, %s21_s21, [#allocation5], %s292_s23, %s292_s23, %s293_s24  }
   0xe   :  { %s294_s27 = smov [#allocation7]  }
   0xf   :  { %s36_s28 = sshll.u32 %s294_s27, 4  ;;  %s37_s28 = int_to_ptr.vmem [resolvable:$true] %s36_s28 }
  0x10   :  { %s253_s29 = scalar_lea.vmem %s37_s28, 256  ;;  %p258_p6 = scmp.lt.s32.totalorder %s37_s28, %s37_s28 }
  0x11   :  { %p254_p5 = scmp.ne.s32.totalorder %s37_s28, %s253_s29  ;;  %p259_p7 = scmp.lt.s32.totalorder %s253_s29, %s253_s29 }
  0x13   :  { %p260_p8 = por %p259_p7, %p258_p6 }
  0x15   :  { %p261_p9 = pnand %p260_p8, %p254_p5 }
  0x17   :  { %264 = shalt.err (!%p261_p9)
}
  0x18   :  { %s295_s30 = smov 64   ;;  %s296_s7 = smov 4  }
  0x19   :  { %42 = dma.hbm_to_vmem [thread:$0]  %s368_s4, 256, %s37_s28, [#allocation8], %s295_s30, %s295_s30, %s296_s7  }
  0x1a   :  { %285 = dma.done.wait [#allocation5], 256  }
  0x1b   :  { %286 = vsyncadd [#allocation5], 4294967040 }
  0x1c   :  { %287 = dma.done.wait [#allocation8], 256  }
  0x1d   :  { %288 = vsyncadd [#allocation8], 4294967040  ;;  %vm54_vm0 = vcmask 261120   ;;  %v52_v0 = vld [vmem:[#allocation4] sm:$0xff]  ;;  %v53_v1 = vld [vmem:[#allocation4 + $0x8] sm:$0xff]  ;;  %v297_v15 = vmov 0.0  }
  0x1e   :  { %v55_v2 = vsel %vm54_vm0, %v52_v0, 0.0  ;;  %v58_v3 = vsel %vm54_vm0, %v53_v1, 0.0  ;;  %v215_v14 = vld [vmem:[#allocation7 + $0x8] sm:$0xff]   ;;  %198 = vmatprep.subr.bf16.mxu0 %v297_v15  ;;  %vm298_vm1 = vmmov 0   ;;  %v216_v16 = vld [vmem:[#allocation7] sm:$0xff]  }
  0x1f   :  { %56 = vadd.xlane.f32.xlu0 %v55_v2  ;;  %202 = vmatprep.mubr.msk.bf16.mxu0 %vm298_vm1, %v297_v15  ;;  %v189_v25 = vld [vmem:[%s366_s2] ss:$0 sm:$0xff]  ;;  %s299_s2 = smov [#allocation9]  }
  0x20   :  { %199 = vmatpush3.bf16.msra.mxu0 %v215_v14  ;;  %v190_v29 = vld [vmem:[%s367_s3] ss:$0 sm:$0xff]  ;;  %s176_s3 = sshll.u32 %s299_s2, 4  ;;  %s177_s3 = int_to_ptr.vmem [resolvable:$true] %s176_s3 }
  0x21   :  { %200 = vmatprep.subr.bf16.mxu0 %v297_v15  ;;  %v191_v34 = vld [vmem:[%s369_s5] ss:$0 sm:$0xff]  ;;  %s265_s14 = scalar_lea.vmem %s177_s3, 256  ;;  %p270_p11 = scmp.lt.s32.totalorder %s177_s3, %s177_s3 }
  0x22   :  { %p266_p10 = scmp.ne.s32.totalorder %s177_s3, %s265_s14  ;;  %p271_p12 = scmp.lt.s32.totalorder %s265_s14, %s265_s14 }
  0x23   :  { %59 = vadd.xlane.f32.xlu0 %v58_v3 }
  0x24   :  { %201 = vmatpush3.bf16.msra.mxu0 %v216_v16  ;;  %p272_p13 = por %p271_p12, %p270_p11 }
  0x26   :  { %p273_p0 = pnand %p272_p13, %p266_p10 }
  0xa8   :  { %v57_v4 = vpop.xlane.xlu0 %56 }
  0xa9   :  { %v61_v5 = vmul.f32 0.03125, %v57_v4 }
  0xab   :  { %v63_v6 = vsub.f32 %v52_v0, %v61_v5 }
  0xac   :  { %v60_v7 = vpop.xlane.xlu0 %59 }
  0xad   :  { %v62_v8 = vmul.f32 0.03125, %v60_v7  ;;  %v65_v9 = vmul.f32 %v63_v6, %v63_v6 }
  0xaf   :  { %v64_v10 = vsub.f32 %v53_v1, %v62_v8  ;;  %v67_v11 = vsel %vm54_vm0, %v65_v9, 0.0 }
  0xb0   :  { %68 = vadd.xlane.f32.xlu1 %v67_v11 }
  0xb1   :  { %v66_v12 = vmul.f32 %v64_v10, %v64_v10 }
  0xb3   :  { %v70_v13 = vsel %vm54_vm0, %v66_v12, 0.0 }
  0xb4   :  { %71 = vadd.xlane.f32.xlu1 %v70_v13 }
 0x139   :  { %v69_v17 = vpop.xlane.xlu1 %68 }
 0x13a   :  { %v73_v18 = vmul.f32 0.03125, %v69_v17 }
 0x13c   :  { %v75_v19 = vadd.f32 1e-05, %v73_v18 }
 0x13d   :  { %v72_v20 = vpop.xlane.xlu1 %71 }
 0x13e   :  { %217 = vrsqrt.f32 %v75_v19  ;;  %v74_v21 = vmul.f32 0.03125, %v72_v20 }
 0x140   :  { %v76_v22 = vadd.f32 1e-05, %v74_v21 }
 0x142   :  { %219 = vrsqrt.f32 %v76_v22 }
 0x14b   :  { %v218_v23 = vpop.eup %217 }
 0x14c   :  { %v79_v24 = vmul.f32 %v218_v23, %v63_v6 }
 0x14e   :  { %v88_v28 = vmul.f32 %v189_v25, %v79_v24 }
 0x14f   :  { %v220_v26 = vpop.eup %219 }
 0x150   :  { %v80_v27 = vmul.f32 %v220_v26, %v64_v10  ;;  %v97_v31 = vadd.f32 %v190_v29, %v88_v28 }
 0x152   :  { %v89_v30 = vmul.f32 %v189_v25, %v80_v27 }
 0x154   :  { %v98_v32 = vadd.f32 %v190_v29, %v89_v30 }
 0x156   :  { %v99_v33 = vpack.c.bf16 %v98_v32, %v97_v31 }
 0x158   :  { %203 = vmatmul.mubr.msk.bf16.vlgmr.msra.gmra.mxu0 %vm54_vm0, %v99_v33 }
 0x218   :  { %v160_v35 = vpop.f32.mrf.mxu0 }
 0x219   :  { %v161_v36 = vadd.f32 %v191_v34, %v160_v35 }
 0x21a   :  { %v204_v37 = vpop.f32.mrf.mxu0 }
 0x21b   :  { %221 = vtanh.f32 %v161_v36 }
 0x21c   :  { %v163_v38 = vpop.f32.mrf.mxu0 }
 0x21d   :  { %v164_v39 = vadd.f32 %v191_v34, %v163_v38 }
 0x21e   :  { %v205_v40 = vpop.f32.mrf.mxu0 }
 0x21f   :  { %223 = vtanh.f32 %v164_v39 }
 0x228   :  { %v222_v41 = vpop.eup %221 }
 0x229   :  { %169 = vst [vmem:[#allocation9] sm:$0xff] %v222_v41 }
 0x22c   :  { %v224_v42 = vpop.eup %223 }
 0x22d   :  { %170 = vst [vmem:[#allocation9 + $0x8] sm:$0xff] %v224_v42 }
 0x22e   :  { %276 = shalt.err (!%p273_p0)
}
 0x22f   :  { %182 = dma.vmem_to_hbm [thread:$0]  %s177_s3, 256, %s370_s6, [#allocation6], %s292_s23, %s292_s23, %s293_s24  }
 0x230   :  { %289 = dma.done.wait [#allocation6], 256  }
 0x231   :  { %290 = vsyncadd [#allocation6], 4294967040 }
 0x232   :  { %186 = vsyncpa [#allocation5], 1 }
 0x233   :  { %187 = vsyncpa [#allocation8], 1 }
 0x234   :  { %188 = vsyncpa [#allocation6], 1 }

</bundles_post_ra>
